<compile_context>
chip_gen: v6e
topology: v6e:2x2x1
jax: 0.10.0
libtpu: 0.0.40
codegen_flags: <defaults>
</compile_context>

<pallas_src>
import numpy as np
import jax
import jax.numpy as jnp
from jax import lax
from jax.experimental import pallas as pl
from jax.experimental.pallas import tpu as pltpu


# Deterministic stand-in for the anchor text file (rows of "d,w,h" ints).
# TODO(synk): the module reads these from `anchor_path`; file I/O is replaced
# by an in-script constant.
ANCHORS_DWH = np.array([[4, 6, 8],
                        [8, 12, 16],
                        [16, 24, 32]], dtype=np.int64)
PYRAMID_LEVELS = [1, 2]


def make_base_anchors(anchors_dwh):
    """Mirrors Anchors.parser_anchor_txt (centered boxes [-d/2,-w/2,-h/2,d/2,w/2,h/2])."""
    a = np.asarray(anchors_dwh, dtype=np.float64)
    A = a.shape[0]
    anchors_zyx = np.zeros((A, 6), dtype=np.float64)
    anchors_zyx[:, 3:] = a
    anchors_zyx[:, 0::3] -= np.tile(anchors_zyx[:, 3] * 0.5, (2, 1)).T
    anchors_zyx[:, 1::3] -= np.tile(anchors_zyx[:, 4] * 0.5, (2, 1)).T
    anchors_zyx[:, 2::3] -= np.tile(anchors_zyx[:, 5] * 0.5, (2, 1)).T
    return anchors_zyx.astype(np.float32)


def _round_up(x, m):
    return ((x + m - 1) // m) * m


def _make_shift_rows(img_shape, pyramid_levels):
    """Compact lane-dense shift table: (3, Ktot) with rows [sz, sy, sx].

    Mirrors Anchors.shift grid construction (np.meshgrid default indexing='xy'),
    concatenated over pyramid levels along the K axis.
    """
    rows = []
    for lvl in pyramid_levels:
        feat = (img_shape + 2 ** lvl - 1) // (2 ** lvl)
        Z, Y, X = (int(v) for v in feat)
        stride = float(2 ** lvl)
        sz = (jnp.arange(Z, dtype=jnp.float32) + 0.5) * stride
        sy = (jnp.arange(Y, dtype=jnp.float32) + 0.5) * stride
        sx = (jnp.arange(X, dtype=jnp.float32) + 0.5) * stride
        gz, gy, gx = jnp.meshgrid(sz, sy, sx, indexing="xy")  # numpy default order
        rows.append(jnp.stack([gz.ravel(), gy.ravel(), gx.ravel()], axis=0))  # (3, K_l)
    return jnp.concatenate(rows, axis=1)                  # (3, Ktot)


def _make_anchor_kernel(base_anchors_f32):
    """Builds the kernel closure; base anchors become Python scalar constants."""
    A = int(base_anchors_f32.shape[0])
    R = A * 6
    anchors_flat = [float(v) for v in np.asarray(base_anchors_f32, np.float32).reshape(-1)]

    def kernel(s_ref, o_ref):
        # s_ref : (3, TK)   lane-dense shift rows [sz, sy, sx]
        # o_ref : (R, TK)   o[a*6 + c, k] = s[c % 3, k] + anchors[a, c]
        R_, _ = o_ref.shape
        s = s_ref[...]                       # (3, TK), loaded once per tile
        sz, sy, sx = s[0:1, :], s[1:2, :], s[2:3, :]   # (1, TK) each

        # One-vreg (R, 1) columns: 0/1 row-selection weights for z/y/x and the
        # per-row base-anchor offset.  Built from a row iota + scalar constants
        # only (no dense constant capture, no extra DMA); negligible cost.
        row = lax.broadcasted_iota(jnp.int32, (R_, 1), 0)
        wz = jnp.zeros((R_, 1), jnp.float32)
        wy = jnp.zeros((R_, 1), jnp.float32)
        wx = jnp.zeros((R_, 1), jnp.float32)
        anchor_col = jnp.zeros((R_, 1), jnp.float32)
        for r in range(R):                   # static unroll over A*6 rows
            m = row == r
            c3 = r % 3
            if c3 == 0:
                wz = jnp.where(m, 1.0, wz)
            elif c3 == 1:
                wy = jnp.where(m, 1.0, wy)
            else:
                wx = jnp.where(m, 1.0, wx)
            anchor_col = jnp.where(m, anchors_flat[r], anchor_col)

        # Single aligned full-block store: (1,TK)*(R,1) broadcasts to (R,TK).
        o_ref[...] = sz * wz + sy * wy + sx * wx + anchor_col

    return kernel, R


# Output depends only on static shapes — compute once per configuration.
_ANCHOR_CACHE = {}


def generate_anchors(image, pyramid_levels, base_anchors, *, max_tile=32768):
    B = int(image.shape[0])
    img_shape = np.array(image.shape[2:])                 # (Z, Y, X), static
    base_anchors = np.asarray(base_anchors, dtype=np.float32)
    A = int(base_anchors.shape[0])

    cache_key = (tuple(int(v) for v in image.shape),
                 tuple(int(p) for p in pyramid_levels),
                 base_anchors.tobytes())
    cached = _ANCHOR_CACHE.get(cache_key)
    if cached is not None:
        return cached

    kernel, R = _make_anchor_kernel(base_anchors)
    rows3 = _make_shift_rows(img_shape, pyramid_levels)   # (3, Ktot)
    Ktot = int(rows3.shape[1])

    # K tile: as large as possible (amortizes ~0.35us/step), 128-aligned, but
    # capped so there are always >= 2 tiles (keeps both v7x TensorCores busy).
    max_tile = max(128, _round_up(max_tile, 128))
    tk = min(max_tile, _round_up(pl.cdiv(Ktot, 2), 128))
    k_pad = _round_up(Ktot, tk)
    if k_pad != Ktot:
        rows3 = jnp.pad(rows3, ((0, 0), (0, k_pad - Ktot)))

    cost = pl.CostEstimate(flops=4 * R * Ktot,
                           transcendentals=0,
                           bytes_accessed=(3 + R) * 4 * Ktot)

    raw = pl.pallas_call(
        kernel,
        out_shape=jax.ShapeDtypeStruct((R, k_pad), jnp.float32),
        grid=(k_pad // tk,),
        in_specs=[pl.BlockSpec((3, tk), lambda i: (0, i))],   # compact shift tile
        out_specs=pl.BlockSpec((R, tk), lambda i: (0, i)),    # lane-dense output
        compiler_params=pltpu.CompilerParams(
            dimension_semantics=("parallel",),    # K tiles split across TCs (v7x)
            vmem_limit_bytes=32 * 1024 * 1024),   # headroom over v5e's 16 MiB default
        cost_estimate=cost,
    )(rows3)

    # Drop K padding, then one XLA layout pass to the torch row order:
    # row index = k * A + a, per-row layout [z1, y1, x1, z2, y2, x2].
    raw = raw[:, :Ktot]                                   # (A*6, Ktot)
    boxes = jnp.transpose(raw.reshape(A, 6, Ktot), (2, 0, 1)).reshape(Ktot * A, 6)

    # Batch: the torch module materializes B identical copies; broadcast here
    # (consumers that can broadcast themselves should use `boxes` directly).
    out = jnp.broadcast_to(boxes[None, :, :], (B, Ktot * A, 6))
    _ANCHOR_CACHE[cache_key] = out
    return out


def reference_anchors_np(image_shape_full, pyramid_levels, anchors_zyx):
    """Direct numpy port of Anchors.forward for verification."""
    image_shape = np.array(image_shape_full[2:])
    image_shapes = [(image_shape + 2 ** x - 1) // 2 ** x for x in pyramid_levels]
    all_anchors = np.zeros((0, 6), dtype=np.float32)
    for idx, p in enumerate(pyramid_levels):
        Z, Y, X = image_shapes[idx]
        shift_z = (np.arange(0, Z) + 0.5) * 2 ** p
        shift_y = (np.arange(0, Y) + 0.5) * 2 ** p
        shift_x = (np.arange(0, X) + 0.5) * 2 ** p
        gz, gy, gx = np.meshgrid(shift_z, shift_y, shift_x)
        shifts = np.vstack((gz.ravel(), gy.ravel(), gx.ravel(),
                            gz.ravel(), gy.ravel(), gx.ravel())).transpose()
        A = anchors_zyx.shape[0]
        K = shifts.shape[0]
        aa = (anchors_zyx.reshape((1, A, 6))
              + shifts.reshape((1, K, 6)).transpose((1, 0, 2)))
        aa = aa.reshape((K * A, 6))
        all_anchors = np.append(all_anchors, aa.astype(np.float32), axis=0)
    all_anchors = np.expand_dims(all_anchors, axis=0)
    return np.repeat(all_anchors, image_shape_full[0], axis=0).astype(np.float32)


if __name__ == "__main__":
    key = jax.random.PRNGKey(0)
    # Small NCDHW image: batch=2, channels=1, (Z, Y, X) = (8, 16, 16)
    image = jax.random.normal(key, (2, 1, 8, 16, 16), dtype=jnp.float32)

    base_anchors = make_base_anchors(ANCHORS_DWH)         # (A=3, 6) float32
    out = generate_anchors(image, PYRAMID_LEVELS, base_anchors)
    out = jax.block_until_ready(out)

    ref = reference_anchors_np(image.shape, PYRAMID_LEVELS,
                               base_anchors.astype(np.float64))
    assert out.shape == ref.shape and out.dtype == jnp.float32
    np.testing.assert_allclose(np.asarray(out), ref, rtol=1e-5, atol=1e-5)
    print("KERNEL_OK")
</pallas_src>

<mosaic_0001>
module attributes {stable_mosaic.version = 11 : i64} {
  func.func @kernel(%arg0: i32, %arg1: memref<3x256xf32, #tpu.memory_space<vmem>>, %arg2: memref<18x256xf32, #tpu.memory_space<vmem>>) attributes {dimension_semantics = [#tpu.dimension_semantics<parallel>], iteration_bounds = array<i64: 2>, scalar_prefetch = 0 : i64, scratch_operands = 0 : i64, tpu.core_type = #tpu.core_type<tc>, window_params = [{transform_indices = @transform_0, window_bounds = array<i64: 3, 256>}, {transform_indices = @transform_1, window_bounds = array<i64: 18, 256>}]} {
    %c0 = arith.constant 0 : index
    %c0_0 = arith.constant 0 : index
    %0 = vector.load %arg1[%c0, %c0_0] : memref<3x256xf32, #tpu.memory_space<vmem>>, vector<3x256xf32>
    %1 = vector.extract_strided_slice %0 {offsets = [0, 0], sizes = [1, 256], strides = [1, 1]} : vector<3x256xf32> to vector<1x256xf32>
    %2 = vector.extract_strided_slice %0 {offsets = [1, 0], sizes = [1, 256], strides = [1, 1]} : vector<3x256xf32> to vector<1x256xf32>
    %3 = vector.extract_strided_slice %0 {offsets = [2, 0], sizes = [1, 256], strides = [1, 1]} : vector<3x256xf32> to vector<1x256xf32>
    %4 = tpu.iota {dimensions = array<i32: 0>} : vector<18x1xi32>
    %cst = arith.constant 0.000000e+00 : f32
    %5 = vector.broadcast %cst : f32 to vector<18x1xf32>
    %cst_1 = arith.constant 0.000000e+00 : f32
    %6 = vector.broadcast %cst_1 : f32 to vector<18x1xf32>
    %cst_2 = arith.constant 0.000000e+00 : f32
    %7 = vector.broadcast %cst_2 : f32 to vector<18x1xf32>
    %cst_3 = arith.constant 0.000000e+00 : f32
    %8 = vector.broadcast %cst_3 : f32 to vector<18x1xf32>
    %c0_i32 = arith.constant 0 : i32
    %9 = vector.broadcast %c0_i32 : i32 to vector<18x1xi32>
    %10 = arith.cmpi eq, %4, %9 : vector<18x1xi32>
    %cst_4 = arith.constant 1.000000e+00 : f32
    %11 = vector.broadcast %cst_4 : f32 to vector<18x1xf32>
    %12 = arith.select %10, %11, %5 : vector<18x1xi1>, vector<18x1xf32>
    %cst_5 = arith.constant -2.000000e+00 : f32
    %13 = vector.broadcast %cst_5 : f32 to vector<18x1xf32>
    %14 = arith.select %10, %13, %8 : vector<18x1xi1>, vector<18x1xf32>
    %c1_i32 = arith.constant 1 : i32
    %15 = vector.broadcast %c1_i32 : i32 to vector<18x1xi32>
    %16 = arith.cmpi eq, %4, %15 : vector<18x1xi32>
    %cst_6 = arith.constant 1.000000e+00 : f32
    %17 = vector.broadcast %cst_6 : f32 to vector<18x1xf32>
    %18 = arith.select %16, %17, %6 : vector<18x1xi1>, vector<18x1xf32>
    %cst_7 = arith.constant -3.000000e+00 : f32
    %19 = vector.broadcast %cst_7 : f32 to vector<18x1xf32>
    %20 = arith.select %16, %19, %14 : vector<18x1xi1>, vector<18x1xf32>
    %c2_i32 = arith.constant 2 : i32
    %21 = vector.broadcast %c2_i32 : i32 to vector<18x1xi32>
    %22 = arith.cmpi eq, %4, %21 : vector<18x1xi32>
    %cst_8 = arith.constant 1.000000e+00 : f32
    %23 = vector.broadcast %cst_8 : f32 to vector<18x1xf32>
    %24 = arith.select %22, %23, %7 : vector<18x1xi1>, vector<18x1xf32>
    %cst_9 = arith.constant -4.000000e+00 : f32
    %25 = vector.broadcast %cst_9 : f32 to vector<18x1xf32>
    %26 = arith.select %22, %25, %20 : vector<18x1xi1>, vector<18x1xf32>
    %c3_i32 = arith.constant 3 : i32
    %27 = vector.broadcast %c3_i32 : i32 to vector<18x1xi32>
    %28 = arith.cmpi eq, %4, %27 : vector<18x1xi32>
    %cst_10 = arith.constant 1.000000e+00 : f32
    %29 = vector.broadcast %cst_10 : f32 to vector<18x1xf32>
    %30 = arith.select %28, %29, %12 : vector<18x1xi1>, vector<18x1xf32>
    %cst_11 = arith.constant 2.000000e+00 : f32
    %31 = vector.broadcast %cst_11 : f32 to vector<18x1xf32>
    %32 = arith.select %28, %31, %26 : vector<18x1xi1>, vector<18x1xf32>
    %c4_i32 = arith.constant 4 : i32
    %33 = vector.broadcast %c4_i32 : i32 to vector<18x1xi32>
    %34 = arith.cmpi eq, %4, %33 : vector<18x1xi32>
    %cst_12 = arith.constant 1.000000e+00 : f32
    %35 = vector.broadcast %cst_12 : f32 to vector<18x1xf32>
    %36 = arith.select %34, %35, %18 : vector<18x1xi1>, vector<18x1xf32>
    %cst_13 = arith.constant 3.000000e+00 : f32
    %37 = vector.broadcast %cst_13 : f32 to vector<18x1xf32>
    %38 = arith.select %34, %37, %32 : vector<18x1xi1>, vector<18x1xf32>
    %c5_i32 = arith.constant 5 : i32
    %39 = vector.broadcast %c5_i32 : i32 to vector<18x1xi32>
    %40 = arith.cmpi eq, %4, %39 : vector<18x1xi32>
    %cst_14 = arith.constant 1.000000e+00 : f32
    %41 = vector.broadcast %cst_14 : f32 to vector<18x1xf32>
    %42 = arith.select %40, %41, %24 : vector<18x1xi1>, vector<18x1xf32>
    %cst_15 = arith.constant 4.000000e+00 : f32
    %43 = vector.broadcast %cst_15 : f32 to vector<18x1xf32>
    %44 = arith.select %40, %43, %38 : vector<18x1xi1>, vector<18x1xf32>
    %c6_i32 = arith.constant 6 : i32
    %45 = vector.broadcast %c6_i32 : i32 to vector<18x1xi32>
    %46 = arith.cmpi eq, %4, %45 : vector<18x1xi32>
    %cst_16 = arith.constant 1.000000e+00 : f32
    %47 = vector.broadcast %cst_16 : f32 to vector<18x1xf32>
    %48 = arith.select %46, %47, %30 : vector<18x1xi1>, vector<18x1xf32>
    %cst_17 = arith.constant -4.000000e+00 : f32
    %49 = vector.broadcast %cst_17 : f32 to vector<18x1xf32>
    %50 = arith.select %46, %49, %44 : vector<18x1xi1>, vector<18x1xf32>
    %c7_i32 = arith.constant 7 : i32
    %51 = vector.broadcast %c7_i32 : i32 to vector<18x1xi32>
    %52 = arith.cmpi eq, %4, %51 : vector<18x1xi32>
    %cst_18 = arith.constant 1.000000e+00 : f32
    %53 = vector.broadcast %cst_18 : f32 to vector<18x1xf32>
    %54 = arith.select %52, %53, %36 : vector<18x1xi1>, vector<18x1xf32>
    %cst_19 = arith.constant -6.000000e+00 : f32
    %55 = vector.broadcast %cst_19 : f32 to vector<18x1xf32>
    %56 = arith.select %52, %55, %50 : vector<18x1xi1>, vector<18x1xf32>
    %c8_i32 = arith.constant 8 : i32
    %57 = vector.broadcast %c8_i32 : i32 to vector<18x1xi32>
    %58 = arith.cmpi eq, %4, %57 : vector<18x1xi32>
    %cst_20 = arith.constant 1.000000e+00 : f32
    %59 = vector.broadcast %cst_20 : f32 to vector<18x1xf32>
    %60 = arith.select %58, %59, %42 : vector<18x1xi1>, vector<18x1xf32>
    %cst_21 = arith.constant -8.000000e+00 : f32
    %61 = vector.broadcast %cst_21 : f32 to vector<18x1xf32>
    %62 = arith.select %58, %61, %56 : vector<18x1xi1>, vector<18x1xf32>
    %c9_i32 = arith.constant 9 : i32
    %63 = vector.broadcast %c9_i32 : i32 to vector<18x1xi32>
    %64 = arith.cmpi eq, %4, %63 : vector<18x1xi32>
    %cst_22 = arith.constant 1.000000e+00 : f32
    %65 = vector.broadcast %cst_22 : f32 to vector<18x1xf32>
    %66 = arith.select %64, %65, %48 : vector<18x1xi1>, vector<18x1xf32>
    %cst_23 = arith.constant 4.000000e+00 : f32
    %67 = vector.broadcast %cst_23 : f32 to vector<18x1xf32>
    %68 = arith.select %64, %67, %62 : vector<18x1xi1>, vector<18x1xf32>
    %c10_i32 = arith.constant 10 : i32
    %69 = vector.broadcast %c10_i32 : i32 to vector<18x1xi32>
    %70 = arith.cmpi eq, %4, %69 : vector<18x1xi32>
    %cst_24 = arith.constant 1.000000e+00 : f32
    %71 = vector.broadcast %cst_24 : f32 to vector<18x1xf32>
    %72 = arith.select %70, %71, %54 : vector<18x1xi1>, vector<18x1xf32>
    %cst_25 = arith.constant 6.000000e+00 : f32
    %73 = vector.broadcast %cst_25 : f32 to vector<18x1xf32>
    %74 = arith.select %70, %73, %68 : vector<18x1xi1>, vector<18x1xf32>
    %c11_i32 = arith.constant 11 : i32
    %75 = vector.broadcast %c11_i32 : i32 to vector<18x1xi32>
    %76 = arith.cmpi eq, %4, %75 : vector<18x1xi32>
    %cst_26 = arith.constant 1.000000e+00 : f32
    %77 = vector.broadcast %cst_26 : f32 to vector<18x1xf32>
    %78 = arith.select %76, %77, %60 : vector<18x1xi1>, vector<18x1xf32>
    %cst_27 = arith.constant 8.000000e+00 : f32
    %79 = vector.broadcast %cst_27 : f32 to vector<18x1xf32>
    %80 = arith.select %76, %79, %74 : vector<18x1xi1>, vector<18x1xf32>
    %c12_i32 = arith.constant 12 : i32
    %81 = vector.broadcast %c12_i32 : i32 to vector<18x1xi32>
    %82 = arith.cmpi eq, %4, %81 : vector<18x1xi32>
    %cst_28 = arith.constant 1.000000e+00 : f32
    %83 = vector.broadcast %cst_28 : f32 to vector<18x1xf32>
    %84 = arith.select %82, %83, %66 : vector<18x1xi1>, vector<18x1xf32>
    %cst_29 = arith.constant -8.000000e+00 : f32
    %85 = vector.broadcast %cst_29 : f32 to vector<18x1xf32>
    %86 = arith.select %82, %85, %80 : vector<18x1xi1>, vector<18x1xf32>
    %c13_i32 = arith.constant 13 : i32
    %87 = vector.broadcast %c13_i32 : i32 to vector<18x1xi32>
    %88 = arith.cmpi eq, %4, %87 : vector<18x1xi32>
    %cst_30 = arith.constant 1.000000e+00 : f32
    %89 = vector.broadcast %cst_30 : f32 to vector<18x1xf32>
    %90 = arith.select %88, %89, %72 : vector<18x1xi1>, vector<18x1xf32>
    %cst_31 = arith.constant -1.200000e+01 : f32
    %91 = vector.broadcast %cst_31 : f32 to vector<18x1xf32>
    %92 = arith.select %88, %91, %86 : vector<18x1xi1>, vector<18x1xf32>
    %c14_i32 = arith.constant 14 : i32
    %93 = vector.broadcast %c14_i32 : i32 to vector<18x1xi32>
    %94 = arith.cmpi eq, %4, %93 : vector<18x1xi32>
    %cst_32 = arith.constant 1.000000e+00 : f32
    %95 = vector.broadcast %cst_32 : f32 to vector<18x1xf32>
    %96 = arith.select %94, %95, %78 : vector<18x1xi1>, vector<18x1xf32>
    %cst_33 = arith.constant -1.600000e+01 : f32
    %97 = vector.broadcast %cst_33 : f32 to vector<18x1xf32>
    %98 = arith.select %94, %97, %92 : vector<18x1xi1>, vector<18x1xf32>
    %c15_i32 = arith.constant 15 : i32
    %99 = vector.broadcast %c15_i32 : i32 to vector<18x1xi32>
    %100 = arith.cmpi eq, %4, %99 : vector<18x1xi32>
    %cst_34 = arith.constant 1.000000e+00 : f32
    %101 = vector.broadcast %cst_34 : f32 to vector<18x1xf32>
    %102 = arith.select %100, %101, %84 : vector<18x1xi1>, vector<18x1xf32>
    %cst_35 = arith.constant 8.000000e+00 : f32
    %103 = vector.broadcast %cst_35 : f32 to vector<18x1xf32>
    %104 = arith.select %100, %103, %98 : vector<18x1xi1>, vector<18x1xf32>
    %c16_i32 = arith.constant 16 : i32
    %105 = vector.broadcast %c16_i32 : i32 to vector<18x1xi32>
    %106 = arith.cmpi eq, %4, %105 : vector<18x1xi32>
    %cst_36 = arith.constant 1.000000e+00 : f32
    %107 = vector.broadcast %cst_36 : f32 to vector<18x1xf32>
    %108 = arith.select %106, %107, %90 : vector<18x1xi1>, vector<18x1xf32>
    %cst_37 = arith.constant 1.200000e+01 : f32
    %109 = vector.broadcast %cst_37 : f32 to vector<18x1xf32>
    %110 = arith.select %106, %109, %104 : vector<18x1xi1>, vector<18x1xf32>
    %c17_i32 = arith.constant 17 : i32
    %111 = vector.broadcast %c17_i32 : i32 to vector<18x1xi32>
    %112 = arith.cmpi eq, %4, %111 : vector<18x1xi32>
    %cst_38 = arith.constant 1.000000e+00 : f32
    %113 = vector.broadcast %cst_38 : f32 to vector<18x1xf32>
    %114 = arith.select %112, %113, %96 : vector<18x1xi1>, vector<18x1xf32>
    %cst_39 = arith.constant 1.600000e+01 : f32
    %115 = vector.broadcast %cst_39 : f32 to vector<18x1xf32>
    %116 = arith.select %112, %115, %110 : vector<18x1xi1>, vector<18x1xf32>
    %117 = vector.broadcast %1 : vector<1x256xf32> to vector<18x256xf32>
    %118 = vector.broadcast %102 : vector<18x1xf32> to vector<18x256xf32>
    %119 = arith.mulf %117, %118 : vector<18x256xf32>
    %120 = vector.broadcast %2 : vector<1x256xf32> to vector<18x256xf32>
    %121 = vector.broadcast %108 : vector<18x1xf32> to vector<18x256xf32>
    %122 = arith.mulf %120, %121 : vector<18x256xf32>
    %123 = arith.addf %119, %122 : vector<18x256xf32>
    %124 = vector.broadcast %3 : vector<1x256xf32> to vector<18x256xf32>
    %125 = vector.broadcast %114 : vector<18x1xf32> to vector<18x256xf32>
    %126 = arith.mulf %124, %125 : vector<18x256xf32>
    %127 = arith.addf %123, %126 : vector<18x256xf32>
    %128 = vector.broadcast %116 : vector<18x1xf32> to vector<18x256xf32>
    %129 = arith.addf %127, %128 : vector<18x256xf32>
    %c0_40 = arith.constant 0 : index
    %c0_41 = arith.constant 0 : index
    %130 = vector.load %arg2[%c0_40, %c0_41] : memref<18x256xf32, #tpu.memory_space<vmem>>, vector<18x256xf32>
    tpu.vector_store %arg2[%c0_40, %c0_41], %129 {strides = array<i32>} : memref<18x256xf32, #tpu.memory_space<vmem>>, vector<18x256xf32>,
    return
  }
  func.func @transform_0(%arg0: i32) -> (i32, i32) {
    %c0_i32 = arith.constant 0 : i32
    %c0_i32_0 = arith.constant 0 : i32
    return %c0_i32, %arg0 : i32, i32
  }
  func.func @transform_1(%arg0: i32) -> (i32, i32) {
    %c0_i32 = arith.constant 0 : i32
    %c0_i32_0 = arith.constant 0 : i32
    return %c0_i32, %arg0 : i32, i32
  }
}

</mosaic_0001>

<bundles_post_ra>
// kernel: tpu_custom_call.1
= control target key start
LH: loop header
LB: loop body
LE: loop exit
PB: predicated region body
PF: predicated region fallthrough
CT: control target
= control target key end

     0   :  { %6 = vsyncpa [#allocation3], 0  ;;  %s850_s0 = inlined_call_operand.hbm [shape: f32[3,512], index: 0, kind: input, shape index: {}]   ;;  %s851_s1 = inlined_call_operand.hbm [shape: f32[18,512], index: 1, kind: output, shape index: {}]  }
   0x1   :  { %8 = vsyncpa [#allocation3 + $0x1], 0 }
   0x2   :  { %9 = vsyncpa [#allocation4], 0 }
   0x3   :  { %11 = vsyncpa [#allocation4 + $0x1], 0  ;;  %s661_s6 = smov 0   ;;  %s663_s7 = smov 0  }
   0x4   :  { %s665_s8 = smov 0   ;;  %s667_s9 = smov 0  }
   0x5 LB: > { %s682_s10 = sadd.s32 4294967295, %s643_s9   ;;  %s486_s11 = sadd.s32 4294967294, %s643_s9   ;;  %s643_s9 = sphi %s667_s9, %s868_s9   ;;  %s639_s8 = sphi %s665_s8, %s867_s8   ;;  %s635_s7 = sphi %s663_s7, %s866_s7   ;;  %s631_s6 = sphi %s661_s6, %s865_s6  }
   0x6   : > { %s686_s12 = sadd.s32 1, %s643_s9   ;;  %s24_s13 = sadd.s32 1, %s639_s8 }
   0x7   : > { %s21_s14 = ssub.s32 %s643_s9, %s686_s12  ;;  %p31_p0 = scmp.ne.s32.totalorder %s639_s8, %s635_s7 }
   0x8   : > { %p22_p1 = scmp.eq.s32.totalorder %s21_s14, 0  ;;  %p32_p2 = scmp.eq.s32.totalorder %s643_s9, 0 }
   0x9   : > { %p37_p3 = scmp.ne.s32.totalorder %s635_s7, %s631_s6  ;;  %p38_p4 = scmp.eq.s32.totalorder %s682_s10, 0 }
   0xa   : > { %s698_s15 = scalar_select %p22_p1, %s639_s8, %s24_s13  }
   0xb   : > { %p700_p5 = por %p32_p2, %p31_p0  ;;  %p704_p6 = por %p38_p4, %p37_p3 }
   0xc   : > { %p61_p7 = scmp.eq.s32.totalorder %s682_s10, 1  ;;  %p67_p8 = scmp.eq.s32.totalorder %s486_s11, 1 }
   0xd   : > { %s855_s17 = scalar_select %p704_p6, 1, 0 }
   0xe   : > { %p513_p10 = scmp.lt.s32.totalorder %s643_s9, 2  ;;  %p711_p11 = por %p61_p7, %p31_p0 }
   0xf   : > { %p715_p12 = por %p67_p8, %p37_p3  ;;  %s87_s20 = sand.u32 1, %s639_s8  }
  0x10   : > { %s856_s18 = scalar_select %p711_p11, 1, 0 }
  0x11   : > { %s857_s19 = scalar_select %p715_p12, 1, 0 }
  0x12   : > { %s498_s21 = sshll.u32 %s643_s9, 7  ;;  %s489_s22 = sshll.u32 %s87_s20, 3 }
  0x13   : > { %s724_s25 = scalar_lea.hbm %s850_s0, %s498_s21  ;;  %s91_s26 = scalar_lea.vmem [#allocation2], %s489_s22 }
  0x14   : > { %s99_s27 = sshll.u32 %s91_s26, 4  ;;  %p728_p13 = pnand %p513_p10, %p700_p5  ;;  %s732_s27 = int_to_ptr.vmem [resolvable:$true] %s99_s27 }
  0x15   : > { %s88_s29 = scalar_lea.sflag [#allocation3], %s87_s20  ;;  %s551_s30 = scalar_lea.hbm %s724_s25, 128 }
  0x16   : > { %p552_p2 = scmp.ne.s32.totalorder %s724_s25, %s551_s30  ;;  %p553_p3 = pneg %p728_p13 }
  0x17   : > { %s556_s4 = scalar_lea.hbm %s850_s0, 256  ;;  %p557_p5 = scmp.lt.s32.totalorder %s724_s25, %s850_s0 }
  0x18   : > { %p554_p4 = pnand %p553_p3, %p552_p2  ;;  %p558_p8 = scmp.lt.s32.totalorder %s556_s4, %s551_s30 }
  0x1a   : > { %p555_p7 = pneg %p554_p4  ;;  %p559_p10 = por %p558_p8, %p557_p5 }
  0x1c   : > { %p560_p9 = pnand %p559_p10, %p555_p7 }
  0x1e   : > { %563 = shalt.err (!%p560_p9)
}
  0x1f   : > { %s564_s13 = scalar_lea.vmem %s732_s27, 128  ;;  %s645_s14 = smov [#allocation2]  }
  0x20   : > { %p565_p0 = scmp.ne.s32.totalorder %s732_s27, %s564_s13  ;;  %s569_s16 = sshll.u32 %s645_s14, 4  ;;  %s570_s16 = int_to_ptr.vmem [resolvable:$false] %s569_s16 }
  0x21   : > { %s571_s20 = scalar_lea.vmem %s570_s16, 256  ;;  %p572_p4 = scmp.lt.s32.totalorder %s732_s27, %s570_s16 }
  0x22   : > { %p567_p1 = pnand %p565_p0, %p553_p3  ;;  %p573_p12 = scmp.lt.s32.totalorder %s571_s20, %s564_s13 }
  0x24   : > { %p568_p2 = pneg %p567_p1  ;;  %p574_p11 = por %p573_p12, %p572_p4 }
  0x26   : > { %p575_p6 = pnand %p574_p11, %p568_p2 }
  0x28   : > { %578 = shalt.err (!%p575_p6)
}
  0x29   : > { %508 = dma.hbm_to_vmem [thread:$0]  (!%p728_p13), %s724_s25, 128, %s732_s27, %s88_s29  }
  0x2a   : > { %p859_p9 = scmp.lt.s32.totalorder %s643_s9, 3  ;;  %p860_p7 = scmp.ge.s32.totalorder %s643_s9, 1 }
  0x2c   : > { %p105_p0 = pnand %p860_p7, %p859_p9 }
  0x2d   : > { %s759_s21 = sand.u32 (!%p105_p0), 1, %s635_s7   ;;  %p861_p6 = scmp.ne.s32.totalorder (!%p105_p0), %s855_s17, 0 }
  0x2e   : > { %108 = sbr.rel (%p105_p0) target bundleno = 103 (0x67), region = 24  ;;  %s493_s22 = sshll.u32 (!%p105_p0), %s759_s21, 3 }
  0x2f   : > { %s111_s23 = scalar_lea.sflag (!%p105_p0), [#allocation3], %s759_s21  ;;  %s114_s24 = scalar_lea.vmem (!%p105_p0), [#allocation2], %s493_s22 }
  0x33   : > { %622 = dma.done.wait (%p861_p6), %s111_s23, 128  }
  0x34   : > { %624 = vsyncadd (%p861_p6), %s111_s23, 4294967168  ;;  %v136_v0 = vlaneseq  ;;  %v646_v2 = vmov 0.0   ;;  %v135_v9 = vld [vmem:[%s114_s24] sm:$0x77]  ;;  %s500_s17 = smul.u32 48, %s759_s21  ;;  %s499_s26 = sshll.u32 %s682_s10, 8 }
  0x35   : > { %s803_s30 = scalar_lea.hbm %s851_s1, %s499_s26  ;;  %s400_s10 = scalar_lea.sflag [#allocation4], %s759_s21 }
  0x36   : > { %v137_v1 = vshrl.u32 %v136_v0, 7  ;;  %s781_s25 = scalar_lea.vmem [#allocation5], %s500_s17  ;;  %p862_p12 = scmp.ne.s32.totalorder %s856_s18, 0 }
  0x37   : > { %s413_s27 = sshll.u32 %s781_s25, 4  ;;  %s647_s3 = smov [#allocation5]   ;;  %s805_s27 = int_to_ptr.vmem [resolvable:$true] %s413_s27 }
  0x38   : > { %vm140_vm0 = vcmp.eq.s32.totalorder %v137_v1, 0  ;;  %vm149_vm1 = vcmp.eq.s32.totalorder %v137_v1, 1  ;;  %vm158_vm2 = vcmp.eq.s32.totalorder %v137_v1, 2  ;;  %vm167_vm3 = vcmp.eq.s32.totalorder %v137_v1, 3  ;;  %s579_s2 = scalar_lea.vmem %s805_s27, 768  ;;  %s583_s4 = sshll.u32 %s647_s3, 4  ;;  %s584_s4 = int_to_ptr.vmem [resolvable:$false] %s583_s4 }
  0x39   : > { %v143_v3 = vsel %vm140_vm0, 1.0, %v646_v2  ;;  %v146_v4 = vsel %vm140_vm0, -2.0, %v646_v2  ;;  %v152_v5 = vsel %vm149_vm1, 1.0, %v646_v2  ;;  %v161_v6 = vsel %vm158_vm2, 1.0, %v646_v2  ;;  %p580_p11 = scmp.ne.s32.totalorder %s805_s27, %s579_s2  ;;  %s585_s5 = scalar_lea.vmem %s584_s4, 1536 }
  0x3a   : > { %v155_v7 = vsel %vm149_vm1, -3.0, %v146_v4  ;;  %v170_v8 = vsel %vm167_vm3, 1.0, %v143_v3  ;;  %vm176_vm4 = vcmp.eq.s32.totalorder %v137_v1, 4  ;;  %vm185_vm5 = vcmp.eq.s32.totalorder %v137_v1, 5  ;;  %p586_p3 = scmp.lt.s32.totalorder %s805_s27, %s584_s4  ;;  %p587_p5 = scmp.lt.s32.totalorder %s585_s5, %s579_s2 }
  0x3b   : > { %v164_v10 = vsel %vm158_vm2, -4.0, %v155_v7  ;;  %v179_v11 = vsel %vm176_vm4, 1.0, %v152_v5  ;;  %v188_v12 = vsel %vm185_vm5, 1.0, %v161_v6  ;;  %vm194_vm6 = vcmp.eq.s32.totalorder %v137_v1, 6  ;;  %p581_p13 = pnand %p580_p11, %p862_p12 }
  0x3c   : > { %v173_v13 = vsel %vm167_vm3, 2.0, %v164_v10  ;;  %v197_v14 = vsel %vm194_vm6, 1.0, %v170_v8  ;;  %vm203_vm7 = vcmp.eq.s32.totalorder %v137_v1, 7  ;;  %v305_v15 = vsub.s32 0, %v137_v1  ;;  %p588_p8 = por %p587_p5, %p586_p3 }
  0x3d   : > { %v182_v16 = vsel %vm176_vm4, 3.0, %v173_v13  ;;  %v206_v17 = vsel %vm203_vm7, 1.0, %v179_v11  ;;  %v309_v18 = vsub.s32 4, %v137_v1  ;;  %v329_v19 = vsub.s32 1, %v137_v1  ;;  %p582_p1 = pneg %p581_p13 }
  0x3e   : > { %v191_v20 = vsel %vm185_vm5, 4.0, %v182_v16  ;;  %v306_v21 = vrot.slane %v135_v9, %v305_v15  ;;  %v333_v22 = vsub.s32 5, %v137_v1  ;;  %v359_v23 = vsub.s32 2, %v137_v1 }
  0x3f   : > { %v200_v24 = vsel %vm194_vm6, -4.0, %v191_v20  ;;  %v310_v25 = vrot.slane %v135_v9, %v309_v18  ;;  %v330_v26 = vrot.slane %v135_v9, %v329_v19  ;;  %v363_v27 = vsub.s32 6, %v137_v1  ;;  %p589_p10 = pnand %p588_p8, %p582_p1 }
  0x40   : > { %v209_v28 = vsel %vm203_vm7, -6.0, %v200_v24  ;;  %v316_v29 = vrot.slane %v306_v21, %v305_v15  ;;  %v334_v30 = vrot.slane %v135_v9, %v333_v22  ;;  %v360_v31 = vrot.slane %v135_v9, %v359_v23 }
  0x41   : > { %v771_v32 = vrot.slane %v310_v25, %v305_v15  ;;  %v340_v33 = vrot.slane %v330_v26, %v329_v19  ;;  %v364_v34 = vrot.slane %v135_v9, %v363_v27  ;;  %v138_v35 = vadd.s32 8, %v137_v1 }
  0x42   : > { %v321_v36 = vmul.f32 %v316_v29, %v197_v14  ;;  %v344_v37 = vrot.slane %v334_v30, %v329_v19  ;;  %v370_v38 = vrot.slane %v360_v31, %v359_v23  ;;  %v773_v39 = vadd.s32 16, %v137_v1 }
  0x43   : > { %v322_v40 = vmul.f32 %v771_v32, %v197_v14  ;;  %v345_v41 = vmul.f32 %v340_v33, %v206_v17  ;;  %v374_v42 = vrot.slane %v364_v34, %v359_v23  ;;  %vm213_vm8 = vcmp.eq.s32.totalorder %v138_v35, 8 }
  0x44   : > { %v346_v43 = vmul.f32 %v344_v37, %v206_v17  ;;  %v375_v44 = vmul.f32 %v370_v38, %v188_v12  ;;  %v216_v45 = vsel %vm213_vm8, 1.0, %v646_v2  ;;  %v219_v46 = vsel %vm213_vm8, -8.0, %v646_v2 }
  0x45   : > { %v351_v47 = vadd.f32 %v345_v41, %v321_v36  ;;  %v376_v48 = vmul.f32 %v374_v42, %v188_v12  ;;  %vm222_vm9 = vcmp.eq.s32.totalorder %v138_v35, 9  ;;  %vm231_vm10 = vcmp.eq.s32.totalorder %v138_v35, 10 }
  0x46   : > { %v352_v49 = vadd.f32 %v346_v43, %v322_v40  ;;  %v225_v50 = vsel %vm222_vm9, 1.0, %v646_v2  ;;  %v228_v51 = vsel %vm222_vm9, 4.0, %v219_v46  ;;  %v234_v52 = vsel %vm231_vm10, 1.0, %v646_v2 }
  0x47   : > { %v381_v53 = vadd.f32 %v375_v44, %v351_v47  ;;  %v237_v54 = vsel %vm231_vm10, 6.0, %v228_v51  ;;  %vm240_vm11 = vcmp.eq.s32.totalorder %v138_v35, 11  ;;  %vm249_vm12 = vcmp.eq.s32.totalorder %v138_v35, 12 }
  0x48   : > { %v382_v55 = vadd.f32 %v376_v48, %v352_v49  ;;  %v243_v56 = vsel %vm240_vm11, 1.0, %v216_v45  ;;  %v246_v57 = vsel %vm240_vm11, 8.0, %v237_v54  ;;  %v252_v58 = vsel %vm249_vm12, 1.0, %v225_v50 }
  0x49   : > { %v387_v59 = vadd.f32 %v381_v53, %v209_v28  ;;  %v255_v60 = vsel %vm249_vm12, -8.0, %v246_v57  ;;  %vm258_vm13 = vcmp.eq.s32.totalorder %v138_v35, 13  ;;  %vm267_vm14 = vcmp.eq.s32.totalorder %v138_v35, 14 }
  0x4a   : > { %v388_v61 = vadd.f32 %v382_v55, %v209_v28  ;;  %v261_v62 = vsel %vm258_vm13, 1.0, %v234_v52  ;;  %v264_v63 = vsel %vm258_vm13, -12.0, %v255_v60  ;;  %v270_v0 = vsel %vm267_vm14, 1.0, %v243_v56 }
  0x4b   : > { %393 = vst [vmem:[%s781_s25] sm:$0xff] %v387_v59  ;;  %v273_v1 = vsel %vm267_vm14, -16.0, %v264_v63  ;;  %vm276_vm15 = vcmp.eq.s32.totalorder %v138_v35, 15  ;;  %v347_v3 = vmul.f32 %v340_v33, %v261_v62  ;;  %v377_v5 = vmul.f32 %v370_v38, %v270_v0 }
  0x4c   : > { %394 = vst [vmem:[%s781_s25 + $0x8] sm:$0xff] %v388_v61  ;;  %v279_v4 = vsel %vm276_vm15, 1.0, %v252_v58  ;;  %v348_v6 = vmul.f32 %v344_v37, %v261_v62  ;;  %v378_v7 = vmul.f32 %v374_v42, %v270_v0  ;;  %vm286_vm0 = vcmp.eq.s32.totalorder %v773_v39, 16 }
  0x4d   : > { %v323_v8 = vmul.f32 %v316_v29, %v279_v4  ;;  %v324_v9 = vmul.f32 %v771_v32, %v279_v4  ;;  %vm295_vm1 = vcmp.eq.s32.totalorder %v773_v39, 17  ;;  %v282_v10 = vsel %vm276_vm15, 8.0, %v273_v1 }
  0x4e   : > { %v289_v11 = vsel %vm286_vm0, 1.0, %v646_v2  ;;  %v298_v12 = vsel %vm295_vm1, 1.0, %v646_v2  ;;  %v325_v13 = vmul.f32 0.0, %v316_v29  ;;  %v292_v16 = vsel %vm286_vm0, 12.0, %v646_v2 }
  0x4f   : > { %v353_v14 = vadd.f32 %v347_v3, %v323_v8  ;;  %v354_v15 = vadd.f32 %v348_v6, %v324_v9  ;;  %v349_v17 = vmul.f32 %v340_v33, %v289_v11  ;;  %v350_v18 = vmul.f32 %v344_v37, %v289_v11 }
  0x50   : > { %v379_v19 = vmul.f32 %v370_v38, %v298_v12  ;;  %v326_v20 = vmul.f32 0.0, %v771_v32  ;;  %v380_v21 = vmul.f32 %v374_v42, %v298_v12  ;;  %v301_v25 = vsel %vm295_vm1, 16.0, %v292_v16 }
  0x51   : > { %v383_v22 = vadd.f32 %v377_v5, %v353_v14  ;;  %v384_v23 = vadd.f32 %v378_v7, %v354_v15  ;;  %v355_v24 = vadd.f32 %v349_v17, %v325_v13 }
  0x52   : > { %v356_v26 = vadd.f32 %v350_v18, %v326_v20 }
  0x53   : > { %v389_v2 = vadd.f32 %v383_v22, %v282_v10  ;;  %v390_v27 = vadd.f32 %v384_v23, %v282_v10  ;;  %v385_v28 = vadd.f32 %v379_v19, %v355_v24 }
  0x54   : > { %v386_v29 = vadd.f32 %v380_v21, %v356_v26 }
  0x55   : > { %395 = vst [vmem:[%s781_s25 + $0x10] sm:$0xff] %v389_v2  ;;  %396 = vst [vmem:[%s781_s25 + $0x18] sm:$0xff] %v390_v27  ;;  %v391_v30 = vadd.f32 %v385_v28, %v301_v25 }
  0x56   : > { %v392_v31 = vadd.f32 %v386_v29, %v301_v25 }
  0x57   : > { %397 = vst [vmem:[%s781_s25 + $0x20] sm:$0x3] %v391_v30 }
  0x58   : > { %398 = vst [vmem:[%s781_s25 + $0x28] sm:$0x3] %v392_v31 }
  0x59   : > { %592 = shalt.err (!%p589_p10)
}
  0x5a   : > { %s593_s11 = scalar_lea.hbm %s803_s30, 768  ;;  %s597_s16 = scalar_lea.hbm %s851_s1, 1536 }
  0x5b   : > { %p594_p2 = scmp.ne.s32.totalorder %s803_s30, %s593_s11  ;;  %p598_p7 = scmp.lt.s32.totalorder %s803_s30, %s851_s1 }
  0x5c   : > { %p599_p0 = scmp.lt.s32.totalorder %s597_s16, %s593_s11 }
  0x5d   : > { %p595_p4 = pnand %p594_p2, %p862_p12 }
  0x5e   : > { %p600_p6 = por %p599_p0, %p598_p7 }
  0x5f   : > { %p596_p9 = pneg %p595_p4 }
  0x61   : > { %p601_p11 = pnand %p600_p6, %p596_p9 }
  0x63   : > { %604 = shalt.err (!%p601_p11)
}
  0x64   : > { %s648_s23 = smov 256   ;;  %s649_s24 = smov 512  }
  0x65   : > { %s650_s17 = smov 16  }
  0x66   : > { %503 = dma.vmem_to_hbm [thread:$0]  (%p862_p12), %s805_s27, 768, %s803_s30, %s400_s10, %s648_s23, %s649_s24, %s650_s17  }
  0x67 PF: > { %s428_s25 = sand.u32 1, %s631_s6   ;;  %p863_p13 = scmp.ne.s32.totalorder %s857_s19, 0 }
  0x68   : > { %p864_p1 = scmp.ge.s32.totalorder %s643_s9, 2  ;;  %s429_s26 = scalar_lea.sflag [#allocation4], %s428_s25 }
  0x6a   : > { %p510_p3 = pnand %p864_p1, %p863_p13 }
  0x6c   : > { %p511_p5 = pneg %p510_p3 }
  0x6e   : > { %626 = dma.done.wait (%p511_p5), %s429_s26, 768  }
  0x6f   : > { %628 = vsyncadd (%p511_p5), %s429_s26, 4294966528  ;;  %p14_p8 = scmp.ge.s32.totalorder %s686_s12, 4   ;;  %s865_s6 = smov %s635_s7 }
  0x70   : > { %s866_s7 = smov %s639_s8  ;;  %s867_s8 = smov %s698_s15 }
  0x71   : > { %s868_s9 = smov %s686_s12  ;;  %16 = sbr.rel (!%p14_p8) target bundleno = 5 (0x5), region = 69 }
  0x76   :  { %434 = vsyncpa [#allocation3], 1 }
  0x77   :  { %436 = vsyncpa [#allocation3 + $0x1], 1 }
  0x78   :  { %437 = vsyncpa [#allocation4], 1 }
  0x79   :  { %439 = vsyncpa [#allocation4 + $0x1], 1 }

</bundles_post_ra>
